<compile_context>
chip_gen: v6e
topology: v6e:2x2x1
jax: 0.10.0
libtpu: 0.0.40
codegen_flags: <defaults>
</compile_context>

<pallas_src>
import functools

import jax
import jax.numpy as jnp
from jax.experimental import pallas as pl
from jax.experimental.pallas import tpu as pltpu

_LANES = 128
_TARGET_BLOCK_BYTES = 4 * 1024 * 1024   # ~4 MiB per block
_MAX_BLOCK_BYTES = 8 * 1024 * 1024      # hard cap for the ragged-last-dim path
_MIN_VMEM_LIMIT = 16 * 1024 * 1024


def _round_up(v, m):
    return -(-v // m) * m


def _heaviside_kernel(x_ref, o_ref, *, neg1_activation):
    # Pure elementwise step; scalar selects (no materialized ones/full vregs).
    x = x_ref[...]
    one = jnp.asarray(1, dtype=x.dtype)
    neg = jnp.asarray(-1 if neg1_activation else 0, dtype=x.dtype)
    o_ref[...] = jnp.where(x >= 0, one, neg)


def heaviside_step(x, *, neg1_activation=False, cancel_gradient=False,
                   inplace=False):
    """Pallas implementation of HeavisideStep.forward.

    cancel_gradient only affects the backward pass in PyTorch; its forward
    hardtanh clamp cannot change the step output, so it is elided.
    """
    del cancel_gradient  # forward no-op (see module/kernel comments)

    orig_shape = x.shape
    dtype = x.dtype
    n = x.size
    if n == 0:
        return x

    if neg1_activation and jnp.issubdtype(dtype, jnp.unsignedinteger):
        raise ValueError(
            f"neg1_activation=True cannot be represented in unsigned dtype "
            f"{dtype}; use a floating-point or signed-integer input.")

    itemsize = jnp.dtype(dtype).itemsize
    # Sub-32-bit dtypes pack along sublanes: 8 rows per vreg for 32-bit,
    # 16 for bf16/f16, 32 for int8/fp8.
    sublanes = 8 * max(1, 4 // itemsize)

    # Layout: lane-dense [rows, 128] when the element count allows it.
    # Otherwise collapse to [rows, last_dim] (last dim = full array dim, which
    # satisfies the TPU block constraint) and let the grid mask the ragged
    # final row-block -- no pad/slice round trips (each would be a full extra
    # HBM pass that cannot fuse across the custom call).
    if n % _LANES == 0:
        lane_cols = _LANES
        rows = n // _LANES
    else:
        lane_cols = orig_shape[-1] if len(orig_shape) >= 1 else 1
        rows = n // lane_cols

    bytes_per_row = lane_cols * itemsize
    if bytes_per_row * sublanes > _MAX_BLOCK_BYTES:
        # Pathological ragged shape: a single sublane group of rows would not
        # fit a sane VMEM block.  Elementwise XLA is already at HBM roofline.
        # TODO(synk): tile the lane axis for huge non-128-multiple last dims.
        neg = -1 if neg1_activation else 0
        return jnp.where(x >= 0, jnp.asarray(1, dtype), jnp.asarray(neg, dtype))

    x2d = x.reshape(rows, lane_cols)

    # Block sizing: ~4 MiB blocks keep the ~0.35 us per-grid-step overhead
    # under ~10% of the DMA time even at v7x's ~3.2 TB/s HBM; the live
    # footprint (2 input + 2 output buffers) is ~16 MiB, and vmem_limit_bytes
    # below raises the scoped-VMEM budget explicitly so this also compiles on
    # v5e (16 MiB default scoped limit, 128 MiB physical VMEM).
    tile_rows = max(
        sublanes,
        (_TARGET_BLOCK_BYTES // bytes_per_row) // sublanes * sublanes,
    )
    rows_rounded = _round_up(rows, sublanes)
    tile_rows = min(tile_rows, rows_rounded)

    # Guarantee >= 2 grid steps whenever the tensor spans more than one
    # sublane group, so "parallel" grid sharding can use both of v7x's
    # TensorCores even for mid-size tensors that fit in a single block.
    if rows_rounded >= 2 * sublanes:
        half_rows = _round_up(-(-rows_rounded // 2), sublanes)
        tile_rows = min(tile_rows, half_rows)

    block_bytes = tile_rows * bytes_per_row
    vmem_limit = int(max(_MIN_VMEM_LIMIT, 5 * block_bytes + (2 << 20)))

    grid = (pl.cdiv(rows, tile_rows),)
    kernel = functools.partial(_heaviside_kernel,
                               neg1_activation=neg1_activation)

    # PyTorch inplace=True path -> alias output onto input 0.  Only pays off
    # when the caller donates x; otherwise XLA protects the input with a copy.
    io_aliases = {0: 0} if inplace else {}

    out2d = pl.pallas_call(
        kernel,
        out_shape=jax.ShapeDtypeStruct((rows, lane_cols), dtype),
        grid_spec=pl.GridSpec(
            grid=grid,
            in_specs=[pl.BlockSpec((tile_rows, lane_cols), lambda i: (i, 0))],
            out_specs=pl.BlockSpec((tile_rows, lane_cols), lambda i: (i, 0)),
        ),
        compiler_params=pltpu.CompilerParams(
            dimension_semantics=("parallel",),
            vmem_limit_bytes=vmem_limit,
        ),
        cost_estimate=pl.CostEstimate(
            flops=n, transcendentals=0, bytes_accessed=2 * n * itemsize),
        input_output_aliases=io_aliases,
    )(x2d)

    return out2d.reshape(orig_shape)


def _reference(x, *, neg1_activation, cancel_gradient):
    if cancel_gradient:
        x = jnp.clip(x, -1.0, 1.0)
    neg_val = jnp.asarray(-1.0 if neg1_activation else 0.0, x.dtype)
    return jnp.where(x >= 0, jnp.ones_like(x), jnp.full_like(x, neg_val))


if __name__ == "__main__":
    key = jax.random.PRNGKey(0)
    ok = True

    # NCHW-style activation inputs, consistent with the PyTorch module usage.
    cases = [
        ((2, 4, 16, 16), jnp.float32),    # aligned: element count % 128 == 0
        ((3, 5, 7), jnp.float32),         # ragged: masked final row-block path
        ((2, 4, 16, 16), jnp.bfloat16),   # sub-32-bit dtype (16-sublane tiles)
    ]

    for shape, dt in cases:
        key, sub = jax.random.split(key)
        x = jax.random.normal(sub, shape, dtype=jnp.float32).astype(dt)
        for neg1 in (False, True):
            for cancel in (False, True):
                out = heaviside_step(x, neg1_activation=neg1,
                                     cancel_gradient=cancel, inplace=False)
                out = jax.block_until_ready(out)
                ref = _reference(x, neg1_activation=neg1,
                                 cancel_gradient=cancel)
                if out.shape != x.shape or out.dtype != x.dtype:
                    ok = False
                if not jnp.array_equal(out, ref):
                    ok = False

    # Special values: -0.0, NaN, +/-inf (NaN >= 0 is False -> neg branch).
    sv = jnp.array([-0.0, 0.0, float("nan"), float("inf"), float("-inf"),
                    1.5, -2.5], dtype=jnp.float32)
    for neg1 in (False, True):
        out = jax.block_until_ready(heaviside_step(sv, neg1_activation=neg1))
        ref = _reference(sv, neg1_activation=neg1, cancel_gradient=False)
        if not jnp.array_equal(out, ref):
            ok = False

    # inplace=True path (aliased output buffer); reference computed first.
    key, sub = jax.random.split(key)
    x_ip = jax.random.normal(sub, (2, 4, 16, 16), dtype=jnp.float32)
    ref_ip = _reference(x_ip, neg1_activation=True, cancel_gradient=False)
    out_ip = jax.block_until_ready(
        heaviside_step(x_ip, neg1_activation=True, inplace=True))
    if not jnp.array_equal(out_ip, ref_ip):
        ok = False

    print("KERNEL_OK" if ok else "KERNEL_MISMATCH")
</pallas_src>

<mosaic_0001>
module attributes {stable_mosaic.version = 11 : i64} {
  func.func @_heaviside_kernel(%arg0: i32, %arg1: memref<8x128xf32, #tpu.memory_space<vmem>>, %arg2: memref<8x128xf32, #tpu.memory_space<vmem>>) attributes {dimension_semantics = [#tpu.dimension_semantics<parallel>], iteration_bounds = array<i64: 2>, scalar_prefetch = 0 : i64, scratch_operands = 0 : i64, tpu.core_type = #tpu.core_type<tc>, window_params = [{transform_indices = @transform_0, window_bounds = array<i64: 8, 128>}, {transform_indices = @transform_1, window_bounds = array<i64: 8, 128>}]} {
    %c0 = arith.constant 0 : index
    %c0_0 = arith.constant 0 : index
    %0 = vector.load %arg1[%c0, %c0_0] : memref<8x128xf32, #tpu.memory_space<vmem>>, vector<8x128xf32>
    %cst = arith.constant 0.000000e+00 : f32
    %1 = vector.broadcast %cst : f32 to vector<8x128xf32>
    %2 = arith.cmpf oge, %0, %1 : vector<8x128xf32>
    %cst_1 = arith.constant 1.000000e+00 : f32
    %cst_2 = arith.constant 0.000000e+00 : f32
    %3 = vector.broadcast %cst_1 : f32 to vector<8x128xf32>
    %4 = vector.broadcast %cst_2 : f32 to vector<8x128xf32>
    %5 = arith.select %2, %3, %4 : vector<8x128xi1>, vector<8x128xf32>
    %c0_3 = arith.constant 0 : index
    %c0_4 = arith.constant 0 : index
    %6 = vector.load %arg2[%c0_3, %c0_4] : memref<8x128xf32, #tpu.memory_space<vmem>>, vector<8x128xf32>
    tpu.vector_store %arg2[%c0_3, %c0_4], %5 {strides = array<i32>} : memref<8x128xf32, #tpu.memory_space<vmem>>, vector<8x128xf32>,
    return
  }
  func.func @transform_0(%arg0: i32) -> (i32, i32) {
    %c0_i32 = arith.constant 0 : i32
    %c0_i32_0 = arith.constant 0 : i32
    return %arg0, %c0_i32 : i32, i32
  }
  func.func @transform_1(%arg0: i32) -> (i32, i32) {
    %c0_i32 = arith.constant 0 : i32
    %c0_i32_0 = arith.constant 0 : i32
    return %arg0, %c0_i32 : i32, i32
  }
}

</mosaic_0001>

<bundles_post_ra>
// kernel: tpu_custom_call.1
= control target key start
LH: loop header
LB: loop body
LE: loop exit
PB: predicated region body
PF: predicated region fallthrough
CT: control target
= control target key end

     0   :  { %6 = vsyncpa [#allocation3], 0  ;;  %s539_s0 = inlined_call_operand.hbm [shape: f32[16,128], index: 0, kind: input, shape index: {}]   ;;  %s540_s1 = inlined_call_operand.hbm [shape: f32[16,128], index: 1, kind: output, shape index: {}]  }
   0x1   :  { %8 = vsyncpa [#allocation3 + $0x1], 0 }
   0x2   :  { %9 = vsyncpa [#allocation4], 0 }
   0x3   :  { %11 = vsyncpa [#allocation4 + $0x1], 0  ;;  %s386_s6 = smov 0   ;;  %s388_s7 = smov 0  }
   0x4   :  { %s390_s8 = smov 0   ;;  %s392_s9 = smov 0  }
   0x5 LB: > { %s407_s10 = sadd.s32 4294967295, %s371_s9   ;;  %s220_s11 = sadd.s32 4294967294, %s371_s9   ;;  %s371_s9 = sphi %s392_s9, %s557_s9   ;;  %s367_s8 = sphi %s390_s8, %s556_s8   ;;  %s363_s7 = sphi %s388_s7, %s555_s7   ;;  %s359_s6 = sphi %s386_s6, %s554_s6  }
   0x6   : > { %s411_s12 = sadd.s32 1, %s371_s9   ;;  %s24_s13 = sadd.s32 1, %s367_s8 }
   0x7   : > { %s21_s14 = ssub.s32 %s371_s9, %s411_s12  ;;  %p31_p0 = scmp.ne.s32.totalorder %s367_s8, %s363_s7 }
   0x8   : > { %p22_p1 = scmp.eq.s32.totalorder %s21_s14, 0  ;;  %p32_p2 = scmp.eq.s32.totalorder %s371_s9, 0 }
   0x9   : > { %p37_p3 = scmp.ne.s32.totalorder %s363_s7, %s359_s6  ;;  %p38_p4 = scmp.eq.s32.totalorder %s407_s10, 0 }
   0xa   : > { %s423_s15 = scalar_select %p22_p1, %s367_s8, %s24_s13  }
   0xb   : > { %p425_p5 = por %p32_p2, %p31_p0  ;;  %p429_p6 = por %p38_p4, %p37_p3 }
   0xc   : > { %p61_p7 = scmp.eq.s32.totalorder %s407_s10, 1  ;;  %p67_p8 = scmp.eq.s32.totalorder %s220_s11, 1 }
   0xd   : > { %s544_s17 = scalar_select %p429_p6, 1, 0 }
   0xe   : > { %p244_p10 = scmp.lt.s32.totalorder %s371_s9, 2  ;;  %p436_p11 = por %p61_p7, %p31_p0 }
   0xf   : > { %p440_p12 = por %p67_p8, %p37_p3  ;;  %s87_s20 = sand.u32 1, %s367_s8  }
  0x10   : > { %s545_s18 = scalar_select %p436_p11, 1, 0 }
  0x11   : > { %s546_s19 = scalar_select %p440_p12, 1, 0 }
  0x12   : > { %s224_s21 = sshll.u32 %s371_s9, 7  ;;  %s223_s22 = sshll.u32 %s87_s20, 3 }
  0x13   : > { %s449_s25 = scalar_lea.hbm %s539_s0, %s224_s21  ;;  %s91_s26 = scalar_lea.vmem [#allocation2], %s223_s22 }
  0x14   : > { %s98_s27 = sshll.u32 %s91_s26, 4  ;;  %p453_p13 = pnand %p244_p10, %p425_p5  ;;  %s457_s27 = int_to_ptr.vmem [resolvable:$true] %s98_s27 }
  0x15   : > { %s88_s29 = scalar_lea.sflag [#allocation3], %s87_s20  ;;  %s279_s30 = scalar_lea.hbm %s449_s25, 128 }
  0x16   : > { %p280_p2 = scmp.ne.s32.totalorder %s449_s25, %s279_s30  ;;  %p281_p3 = pneg %p453_p13 }
  0x17   : > { %s284_s4 = scalar_lea.hbm %s539_s0, 256  ;;  %p285_p5 = scmp.lt.s32.totalorder %s449_s25, %s539_s0 }
  0x18   : > { %p282_p4 = pnand %p281_p3, %p280_p2  ;;  %p286_p8 = scmp.lt.s32.totalorder %s284_s4, %s279_s30 }
  0x1a   : > { %p283_p7 = pneg %p282_p4  ;;  %p287_p10 = por %p286_p8, %p285_p5 }
  0x1c   : > { %p288_p9 = pnand %p287_p10, %p283_p7 }
  0x1e   : > { %291 = shalt.err (!%p288_p9)
}
  0x1f   : > { %s292_s13 = scalar_lea.vmem %s457_s27, 128  ;;  %s373_s14 = smov [#allocation2]  }
  0x20   : > { %p293_p0 = scmp.ne.s32.totalorder %s457_s27, %s292_s13  ;;  %s297_s16 = sshll.u32 %s373_s14, 4  ;;  %s298_s16 = int_to_ptr.vmem [resolvable:$false] %s297_s16 }
  0x21   : > { %s299_s20 = scalar_lea.vmem %s298_s16, 256  ;;  %p300_p4 = scmp.lt.s32.totalorder %s457_s27, %s298_s16 }
  0x22   : > { %p295_p1 = pnand %p293_p0, %p281_p3  ;;  %p301_p12 = scmp.lt.s32.totalorder %s299_s20, %s292_s13 }
  0x24   : > { %p296_p2 = pneg %p295_p1  ;;  %p302_p11 = por %p301_p12, %p300_p4 }
  0x26   : > { %p303_p6 = pnand %p302_p11, %p296_p2 }
  0x28   : > { %306 = shalt.err (!%p303_p6)
}
  0x29   : > { %239 = dma.hbm_to_vmem [thread:$0]  (!%p453_p13), %s449_s25, 128, %s457_s27, %s88_s29  }
  0x2a   : > { %p548_p9 = scmp.lt.s32.totalorder %s371_s9, 3  ;;  %p549_p7 = scmp.ge.s32.totalorder %s371_s9, 1 }
  0x2c   : > { %p104_p0 = pnand %p549_p7, %p548_p9 }
  0x2d   : > { %s484_s21 = sand.u32 (!%p104_p0), 1, %s363_s7   ;;  %p550_p6 = scmp.ne.s32.totalorder (!%p104_p0), %s544_s17, 0 }
  0x2e   : > { %107 = sbr.rel (%p104_p0) target bundleno = 77 (0x4d), region = 24  ;;  %s226_s22 = sshll.u32 (!%p104_p0), %s484_s21, 3 }
  0x2f   : > { %s110_s23 = scalar_lea.sflag (!%p104_p0), [#allocation3], %s484_s21  ;;  %s113_s24 = scalar_lea.vmem (!%p104_p0), [#allocation2], %s226_s22 }
  0x33   : > { %350 = dma.done.wait (%p550_p6), %s110_s23, 128  }
  0x34   : > { %352 = vsyncadd (%p550_p6), %s110_s23, 4294967168  ;;  %s131_s25 = scalar_lea.vmem [#allocation5], %s226_s22  ;;  %s229_s27 = sshll.u32 %s407_s10, 7  ;;  %v132_v0 = vld [vmem:[%s113_s24] sm:$0xff]  ;;  %v374_v1 = vmov 0.0  }
  0x35   : > { %s150_s26 = sshll.u32 %s131_s25, 4  ;;  %vm133_vm0 = vcmp.ge.f32.partialorder %v132_v0, 0.0  ;;  %s498_s30 = scalar_lea.hbm %s540_s1, %s229_s27  ;;  %s493_s26 = int_to_ptr.vmem [resolvable:$true] %s150_s26 }
  0x36   : > { %v134_v2 = vsel %vm133_vm0, 1.0, %v374_v1  ;;  %s137_s17 = scalar_lea.sflag [#allocation4], %s484_s21  ;;  %s307_s2 = scalar_lea.vmem %s493_s26, 128 }
  0x37   : > { %135 = vst [vmem:[%s131_s25] sm:$0xff] %v134_v2  ;;  %p308_p11 = scmp.ne.s32.totalorder %s493_s26, %s307_s2  ;;  %p551_p12 = scmp.ne.s32.totalorder %s545_s18, 0 }
  0x38   : > { %s375_s10 = smov [#allocation5]  }
  0x39   : > { %p309_p13 = pnand %p308_p11, %p551_p12  ;;  %s311_s3 = sshll.u32 %s375_s10, 4  ;;  %s312_s3 = int_to_ptr.vmem [resolvable:$false] %s311_s3 }
  0x3a   : > { %s313_s4 = scalar_lea.vmem %s312_s3, 256  ;;  %p314_p3 = scmp.lt.s32.totalorder %s493_s26, %s312_s3 }
  0x3b   : > { %p310_p1 = pneg %p309_p13  ;;  %p315_p5 = scmp.lt.s32.totalorder %s313_s4, %s307_s2 }
  0x3d   : > { %p316_p8 = por %p315_p5, %p314_p3 }
  0x3f   : > { %p317_p10 = pnand %p316_p8, %p310_p1 }
  0x41   : > { %320 = shalt.err (!%p317_p10)
}
  0x42   : > { %s321_s5 = scalar_lea.hbm %s498_s30, 128  ;;  %s325_s14 = scalar_lea.hbm %s540_s1, 256 }
  0x43   : > { %p322_p2 = scmp.ne.s32.totalorder %s498_s30, %s321_s5  ;;  %p326_p7 = scmp.lt.s32.totalorder %s498_s30, %s540_s1 }
  0x44   : > { %p327_p0 = scmp.lt.s32.totalorder %s325_s14, %s321_s5 }
  0x45   : > { %p323_p4 = pnand %p322_p2, %p551_p12 }
  0x46   : > { %p328_p6 = por %p327_p0, %p326_p7 }
  0x47   : > { %p324_p9 = pneg %p323_p4 }
  0x49   : > { %p329_p11 = pnand %p328_p6, %p324_p9 }
  0x4b   : > { %332 = shalt.err (!%p329_p11)
}
  0x4c   : > { %234 = dma.vmem_to_hbm [thread:$0]  (%p551_p12), %s493_s26, 128, %s498_s30, %s137_s17  }
  0x4d PF: > { %s162_s21 = sand.u32 1, %s359_s6   ;;  %p552_p13 = scmp.ne.s32.totalorder %s546_s19, 0 }
  0x4e   : > { %p553_p1 = scmp.ge.s32.totalorder %s371_s9, 2  ;;  %s163_s22 = scalar_lea.sflag [#allocation4], %s162_s21 }
  0x50   : > { %p241_p3 = pnand %p553_p1, %p552_p13 }
  0x52   : > { %p242_p5 = pneg %p241_p3 }
  0x54   : > { %354 = dma.done.wait (%p242_p5), %s163_s22, 128  }
  0x55   : > { %356 = vsyncadd (%p242_p5), %s163_s22, 4294967168  ;;  %p14_p8 = scmp.ge.s32.totalorder %s411_s12, 4   ;;  %s554_s6 = smov %s363_s7 }
  0x56   : > { %s555_s7 = smov %s367_s8  ;;  %s556_s8 = smov %s423_s15 }
  0x57   : > { %s557_s9 = smov %s411_s12  ;;  %16 = sbr.rel (!%p14_p8) target bundleno = 5 (0x5), region = 69 }
  0x5c   :  { %168 = vsyncpa [#allocation3], 1 }
  0x5d   :  { %170 = vsyncpa [#allocation3 + $0x1], 1 }
  0x5e   :  { %171 = vsyncpa [#allocation4], 1 }
  0x5f   :  { %173 = vsyncpa [#allocation4 + $0x1], 1 }

</bundles_post_ra>
